<compile_context>
chip_gen: v6e
topology: v6e:2x2x1
jax: 0.10.0
libtpu: 0.0.40
codegen_flags: <defaults>
</compile_context>

<pallas_src>
import functools

import numpy as np
import jax
import jax.numpy as jnp
from jax import lax
from jax.experimental import pallas as pl
from jax.experimental.pallas import tpu as pltpu


# ----------------------------------------------------------------------------
# Fused kernel: BN (stats + affine) -> triu -> sum(-1) -> neck -> merged heads
# ----------------------------------------------------------------------------
def _simple_proposal_kernel(x_ref, sg_ref, w_ref, b_ref, out_ref, *, num_proposal):
    BC, H, W = x_ref.shape
    L = H                      # neck width == H (sum over last dim leaves (BC, H))
    Q = L // 4
    P = num_proposal
    OUT_W = out_ref.shape[-1]  # lane-dense (>=128) padded output width

    x = x_ref[...]                                               # (BC, H, W) f32

    # ---- BatchNorm2d (training-mode) statistics, f32 accumulation ----
    rs = jnp.sum(jnp.sum(x, axis=2), axis=1, keepdims=True)      # (BC, 1)  sum x
    rq = jnp.sum(jnp.sum(x * x, axis=2), axis=1, keepdims=True)  # (BC, 1)  sum x^2
    lane2 = lax.broadcasted_iota(jnp.int32, (BC, 2), 1)
    rsq = jnp.where(lane2 == 0, rs, rq)                          # (BC, 2) [sum|sumsq]

    sg = sg_ref[...]                                             # (BC, BC + 2)
    stat = sg[:, :BC]                                            # channel-avg matrix
    gamma = sg[:, BC:BC + 1]
    beta = sg[:, BC + 1:BC + 2]

    # single fused stat matmul: col 0 -> per-channel E[x], col 1 -> E[x^2]
    m_e = jnp.dot(stat, rsq, preferred_element_type=jnp.float32)  # (BC, 2)
    mean = m_e[:, 0:1]
    var = jnp.maximum(m_e[:, 1:2] - mean * mean, 0.0)             # clamp cancellation
    inv_std = lax.rsqrt(var + 1e-5)
    scale = gamma * inv_std                                       # (BC, 1)
    shift = beta - mean * scale                                   # (BC, 1)

    # ---- triu + sum over last dim, fused with the BN affine via linearity ----
    # sum_{w>=h}(scale*x + shift) = scale * sum_{w>=h} x + shift * (W - h)
    row = lax.broadcasted_iota(jnp.int32, (H, W), 0)
    col = lax.broadcasted_iota(jnp.int32, (H, W), 1)
    mask = (col >= row).astype(jnp.float32)                       # (H, W)
    s = jnp.sum(x * mask[None, :, :], axis=-1)                    # (BC, H)
    cnt = jnp.maximum(
        W - lax.broadcasted_iota(jnp.int32, (1, H), 1), 0).astype(jnp.float32)
    x_v = scale * s + shift * cnt                                 # (BC, L) f32

    # ---- neck: 4 x (Linear -> ReLU); bf16 MXU operands, f32 accumulate ----
    h = x_v
    for k in range(4):
        h = jnp.maximum(
            jnp.dot(h.astype(jnp.bfloat16), w_ref[k, :L, :L],
                    preferred_element_type=jnp.float32)
            + b_ref[k:k + 1, :L],
            0.0)

    # ---- merged heads (head_p || head_c run as one chain) ----
    hh = jnp.maximum(
        jnp.dot(h.astype(jnp.bfloat16), w_ref[4, :L, :2 * Q],
                preferred_element_type=jnp.float32)
        + b_ref[4:5, :2 * Q],
        0.0)                                                      # (BC, 2Q)
    for k in range(2):
        hh = jnp.maximum(
            jnp.dot(hh.astype(jnp.bfloat16), w_ref[5 + k, :2 * Q, :2 * Q],
                    preferred_element_type=jnp.float32)
            + b_ref[5 + k:6 + k, :2 * Q],
            0.0)
    z = (jnp.dot(hh.astype(jnp.bfloat16), w_ref[7, :2 * Q, :OUT_W],
                 preferred_element_type=jnp.float32)
         + b_ref[7:8, :OUT_W])                                    # (BC, OUT_W)

    # lanes [0,P): sigmoid (head_p); lanes [P,3P): relu6/6 (head_c); rest = 0 pad
    lane = lax.broadcasted_iota(jnp.int32, z.shape, 1)
    sig = pl.reciprocal(1.0 + jnp.exp(-z), approx=True)           # divide on the EUP
    c6 = jnp.clip(z, 0.0, 6.0) * (1.0 / 6.0)
    out_ref[...] = jnp.where(lane < P, sig, c6)


# ----------------------------------------------------------------------------
# One-time closure builder: packs parameters once, returns a jitted forward(x)
# ----------------------------------------------------------------------------
def make_simple_proposal(params, batch, channels, height, width):
    B, C, H, W = int(batch), int(channels), int(height), int(width)
    L = H
    P = int(params["num_proposal"])
    Q = L // 4
    BC = B * C
    OUT_W = max(128, ((3 * P + 127) // 128) * 128)   # lane-dense output width
    DW = max(L, 2 * Q, OUT_W)                        # packed weight lane width
    DH = max(L, 2 * Q)                               # packed weight sublane height

    # --- stat matrix + gamma/beta columns: one (BC, BC+2) constant ---
    ch = np.arange(BC) % C
    stat = (ch[:, None] == ch[None, :]).astype(np.float32) / float(B * H * W)
    gamma = np.tile(np.asarray(params["bn_gamma"], np.float32), B)
    beta = np.tile(np.asarray(params["bn_beta"], np.float32), B)
    sg = np.concatenate([stat, gamma[:, None], beta[:, None]], axis=1)

    # --- all 8 layer weights / biases packed into two zero-padded stacks ---
    w_pack = np.zeros((8, DH, DW), np.float32)
    b_pack = np.zeros((8, DW), np.float32)
    for k, (w, b) in enumerate(params["neck"]):
        w_pack[k, :L, :L] = np.asarray(w, np.float32)
        b_pack[k, :L] = np.asarray(b, np.float32)
    (wp1, bp1), (wp2, bp2), (wp3, bp3), (wp4, bp4) = [
        (np.asarray(w, np.float32), np.asarray(b, np.float32))
        for (w, b) in params["head_p"]]
    (wc1, bc1), (wc2, bc2), (wc3, bc3), (wc4, bc4) = [
        (np.asarray(w, np.float32), np.asarray(b, np.float32))
        for (w, b) in params["head_c"]]
    # head layer 1: column-concat [W_p1 | W_c1]
    w_pack[4, :L, :Q] = wp1
    w_pack[4, :L, Q:2 * Q] = wc1
    b_pack[4, :Q] = bp1
    b_pack[4, Q:2 * Q] = bc1
    # head layers 2, 3: block-diag
    w_pack[5, :Q, :Q] = wp2
    w_pack[5, Q:2 * Q, Q:2 * Q] = wc2
    b_pack[5, :Q] = bp2
    b_pack[5, Q:2 * Q] = bc2
    w_pack[6, :Q, :Q] = wp3
    w_pack[6, Q:2 * Q, Q:2 * Q] = wc3
    b_pack[6, :Q] = bp3
    b_pack[6, Q:2 * Q] = bc3
    # head layer 4: block-diag; out lanes [0,P) -> p, [P,3P) -> c, rest zero pad
    w_pack[7, :Q, :P] = wp4
    w_pack[7, Q:2 * Q, P:3 * P] = wc4
    b_pack[7, :P] = bp4
    b_pack[7, P:3 * P] = bc4

    sg_dev = jnp.asarray(sg, jnp.float32)
    w_dev = jnp.asarray(w_pack, jnp.bfloat16)   # bf16 MXU operands, half the bytes
    b_dev = jnp.asarray(b_pack, jnp.float32)    # biases added in f32

    call = pl.pallas_call(
        functools.partial(_simple_proposal_kernel, num_proposal=P),
        out_shape=jax.ShapeDtypeStruct((BC, OUT_W), jnp.float32),
        in_specs=[pl.BlockSpec(memory_space=pltpu.MemorySpace.VMEM)] * 4,
        out_specs=pl.BlockSpec(memory_space=pltpu.MemorySpace.VMEM),
        # No grid: the whole problem (<1 MiB) fits one VMEM block on every
        # generation (128 MiB v5e/v6e, 64 MiB v7x).  If B*C / L ever scale up,
        # tile over B*C with grid=(BC//tile,) and
        # dimension_semantics=("parallel",) so v7x's second TensorCore is used,
        # and present x lane-dense ((BC, H*W)) for DMA/vreg efficiency.
    )

    def forward(x):
        x_bc = x.reshape(BC, H, W).astype(jnp.float32)
        out = call(x_bc, sg_dev, w_dev, b_dev)
        out = out[:, :3 * P].reshape(B, C, 3 * P)
        prop = {"p": out[..., :P],
                "c_1": out[..., P:2 * P],
                "c_2": out[..., 2 * P:]}
        return {"x_proposal": prop, "y_proposal": prop}

    return jax.jit(forward)


# ----------------------------------------------------------------------------
# Deterministic parameter init (weights stored (in, out): kernel does x @ W + b,
# equivalent to the PyTorch x @ W_pt.T + b)
# ----------------------------------------------------------------------------
def init_params(key, length=32, num_proposal=4, channels=3):
    L, P = length, num_proposal

    def lin(k, din, dout):
        kw, kb = jax.random.split(k)
        w = jax.random.normal(kw, (din, dout), jnp.float32) / jnp.sqrt(float(din))
        b = jax.random.normal(kb, (dout,), jnp.float32) * 0.01
        return (w, b)

    keys = jax.random.split(key, 12)
    neck = [lin(keys[i], L, L) for i in range(4)]
    head_p_dims = [(L, L // 4), (L // 4, L // 4), (L // 4, L // 4), (L // 4, P)]
    head_c_dims = [(L, L // 4), (L // 4, L // 4), (L // 4, L // 4), (L // 4, 2 * P)]
    head_p = [lin(keys[4 + i], *head_p_dims[i]) for i in range(4)]
    head_c = [lin(keys[8 + i], *head_c_dims[i]) for i in range(4)]
    return {
        "neck": neck,
        "head_p": head_p,
        "head_c": head_c,
        "bn_gamma": jnp.ones((channels,), jnp.float32),
        "bn_beta": jnp.zeros((channels,), jnp.float32),
        "num_proposal": P,
    }


# ----------------------------------------------------------------------------
# Pure-JAX reference (training-mode BatchNorm semantics) for a sanity check
# ----------------------------------------------------------------------------
def _reference_forward(x, params):
    P = params["num_proposal"]
    B, C, H, W = x.shape
    mean = jnp.mean(x, axis=(0, 2, 3), keepdims=True)
    var = jnp.mean(jnp.square(x - mean), axis=(0, 2, 3), keepdims=True)
    g = params["bn_gamma"].reshape(1, C, 1, 1)
    b = params["bn_beta"].reshape(1, C, 1, 1)
    xn = g * (x - mean) * lax.rsqrt(var + 1e-5) + b
    mask = jnp.triu(jnp.ones((H, W), jnp.float32))
    h = jnp.sum(xn * mask, axis=-1)                           # (B, C, H)
    for (w, bb) in params["neck"]:
        h = jax.nn.relu(h @ w + bb)
    hp = h
    for (w, bb) in params["head_p"][:3]:
        hp = jax.nn.relu(hp @ w + bb)
    wp4, bp4 = params["head_p"][3]
    p = jax.nn.sigmoid(hp @ wp4 + bp4)
    hc = h
    for (w, bb) in params["head_c"][:3]:
        hc = jax.nn.relu(hc @ w + bb)
    wc4, bc4 = params["head_c"][3]
    c = jnp.clip(hc @ wc4 + bc4, 0.0, 6.0) / 6.0
    return p, c[..., :P], c[..., P:]


if __name__ == "__main__":
    key = jax.random.PRNGKey(0)
    kx, kp = jax.random.split(key)

    # Small shapes consistent with the module: BatchNorm2d(3) -> C=3,
    # length = H = W = 32, num_proposal = 4.
    B, C, L, P = 2, 3, 32, 4
    x = jax.random.normal(kx, (B, C, L, L), jnp.float32)
    params = init_params(kp, length=L, num_proposal=P, channels=C)

    forward = make_simple_proposal(params, B, C, L, L)   # packing happens once here
    out = forward(x)
    jax.block_until_ready(out)

    assert out["x_proposal"]["p"].shape == (B, C, P)
    assert out["x_proposal"]["c_1"].shape == (B, C, P)
    assert out["x_proposal"]["c_2"].shape == (B, C, P)
    assert out["y_proposal"]["p"].shape == (B, C, P)

    # Sanity check vs pure-JAX reference (loose tolerance: bf16 MXU operands).
    p_ref, c1_ref, c2_ref = _reference_forward(x, params)
    np.testing.assert_allclose(np.asarray(out["x_proposal"]["p"]),
                               np.asarray(p_ref), atol=5e-2)
    np.testing.assert_allclose(np.asarray(out["x_proposal"]["c_1"]),
                               np.asarray(c1_ref), atol=5e-2)
    np.testing.assert_allclose(np.asarray(out["x_proposal"]["c_2"]),
                               np.asarray(c2_ref), atol=5e-2)

    print("KERNEL_OK")
</pallas_src>

<mosaic_0001>
module attributes {stable_mosaic.version = 11 : i64} {
  func.func @_simple_proposal_kernel(%arg0: memref<6x32x32xf32, #tpu.memory_space<vmem>>, %arg1: memref<6x8xf32, #tpu.memory_space<vmem>>, %arg2: memref<8x32x128xbf16, #tpu.memory_space<vmem>>, %arg3: memref<8x128xf32, #tpu.memory_space<vmem>>, %arg4: memref<6x128xf32, #tpu.memory_space<vmem>>) attributes {dimension_semantics = [], scalar_prefetch = 0 : i64, scratch_operands = 0 : i64, tpu.core_type = #tpu.core_type<tc>} {
    %c0 = arith.constant 0 : index
    %c0_0 = arith.constant 0 : index
    %c0_1 = arith.constant 0 : index
    %0 = vector.load %arg0[%c0, %c0_0, %c0_1] : memref<6x32x32xf32, #tpu.memory_space<vmem>>, vector<6x32x32xf32>
    %cst = arith.constant dense<0.000000e+00> : vector<6x32xf32>
    %1 = vector.multi_reduction <add>, %0, %cst [2] : vector<6x32x32xf32> to vector<6x32xf32>
    %cst_2 = arith.constant dense<0.000000e+00> : vector<6xf32>
    %2 = vector.multi_reduction <add>, %1, %cst_2 [1] : vector<6x32xf32> to vector<6xf32>
    %3 = vector.shape_cast %2 : vector<6xf32> to vector<6x1xf32>
    %4 = arith.mulf %0, %0 : vector<6x32x32xf32>
    %cst_3 = arith.constant dense<0.000000e+00> : vector<6x32xf32>
    %5 = vector.multi_reduction <add>, %4, %cst_3 [2] : vector<6x32x32xf32> to vector<6x32xf32>
    %cst_4 = arith.constant dense<0.000000e+00> : vector<6xf32>
    %6 = vector.multi_reduction <add>, %5, %cst_4 [1] : vector<6x32xf32> to vector<6xf32>
    %7 = vector.shape_cast %6 : vector<6xf32> to vector<6x1xf32>
    %8 = tpu.iota {dimensions = array<i32: 1>} : vector<6x2xi32>
    %c0_i32 = arith.constant 0 : i32
    %9 = vector.broadcast %c0_i32 : i32 to vector<6x2xi32>
    %10 = arith.cmpi eq, %8, %9 : vector<6x2xi32>
    %11 = vector.shape_cast %3 : vector<6x1xf32> to vector<6x1xf32>
    %12 = vector.broadcast %11 : vector<6x1xf32> to vector<6x2xf32>
    %13 = vector.shape_cast %7 : vector<6x1xf32> to vector<6x1xf32>
    %14 = vector.broadcast %13 : vector<6x1xf32> to vector<6x2xf32>
    %15 = arith.select %10, %12, %14 : vector<6x2xi1>, vector<6x2xf32>
    %c0_5 = arith.constant 0 : index
    %c0_6 = arith.constant 0 : index
    %16 = vector.load %arg1[%c0_5, %c0_6] : memref<6x8xf32, #tpu.memory_space<vmem>>, vector<6x8xf32>
    %17 = vector.extract_strided_slice %16 {offsets = [0, 0], sizes = [6, 6], strides = [1, 1]} : vector<6x8xf32> to vector<6x6xf32>
    %18 = vector.extract_strided_slice %16 {offsets = [0, 6], sizes = [6, 1], strides = [1, 1]} : vector<6x8xf32> to vector<6x1xf32>
    %19 = vector.extract_strided_slice %16 {offsets = [0, 7], sizes = [6, 1], strides = [1, 1]} : vector<6x8xf32> to vector<6x1xf32>
    %cst_7 = arith.constant dense<0.000000e+00> : vector<6x2xf32>
    %20 = tpu.matmul %17, %15, %cst_7 {dimension_numbers = #tpu.dot_dimension_numbers<[1], [0], [0], [1], [0, 0, 1, 1], [], []>} : vector<6x6xf32>, vector<6x2xf32>, vector<6x2xf32> -> vector<6x2xf32>
    %21 = vector.extract_strided_slice %20 {offsets = [0, 0], sizes = [6, 1], strides = [1, 1]} : vector<6x2xf32> to vector<6x1xf32>
    %22 = vector.extract_strided_slice %20 {offsets = [0, 1], sizes = [6, 1], strides = [1, 1]} : vector<6x2xf32> to vector<6x1xf32>
    %23 = arith.mulf %21, %21 : vector<6x1xf32>
    %24 = arith.subf %22, %23 : vector<6x1xf32>
    %cst_8 = arith.constant 0.000000e+00 : f32
    %25 = vector.broadcast %cst_8 : f32 to vector<6x1xf32>
    %26 = arith.maximumf %24, %25 : vector<6x1xf32>
    %cst_9 = arith.constant 9.99999974E-6 : f32
    %27 = vector.broadcast %cst_9 : f32 to vector<6x1xf32>
    %28 = arith.addf %26, %27 : vector<6x1xf32>
    %29 = math.rsqrt %28 : vector<6x1xf32>
    %30 = arith.mulf %18, %29 : vector<6x1xf32>
    %31 = arith.mulf %21, %30 : vector<6x1xf32>
    %32 = arith.subf %19, %31 : vector<6x1xf32>
    %33 = tpu.iota {dimensions = array<i32: 0>} : vector<32x32xi32>
    %34 = tpu.iota {dimensions = array<i32: 1>} : vector<32x32xi32>
    %35 = arith.cmpi sge, %34, %33 : vector<32x32xi32>
    %36 = arith.extui %35 : vector<32x32xi1> to vector<32x32xi32>
    %37 = arith.sitofp %36 : vector<32x32xi32> to vector<32x32xf32>
    %38 = vector.shape_cast %37 : vector<32x32xf32> to vector<1x32x32xf32>
    %39 = vector.broadcast %38 : vector<1x32x32xf32> to vector<6x32x32xf32>
    %40 = arith.mulf %0, %39 : vector<6x32x32xf32>
    %cst_10 = arith.constant dense<0.000000e+00> : vector<6x32xf32>
    %41 = vector.multi_reduction <add>, %40, %cst_10 [2] : vector<6x32x32xf32> to vector<6x32xf32>
    %42 = tpu.iota {dimensions = array<i32: 1>} : vector<1x32xi32>
    %c32_i32 = arith.constant 32 : i32
    %43 = vector.broadcast %c32_i32 : i32 to vector<1x32xi32>
    %44 = arith.subi %43, %42 : vector<1x32xi32>
    %c0_i32_11 = arith.constant 0 : i32
    %45 = vector.broadcast %c0_i32_11 : i32 to vector<1x32xi32>
    %46 = arith.maxsi %44, %45 : vector<1x32xi32>
    %47 = arith.sitofp %46 : vector<1x32xi32> to vector<1x32xf32>
    %48 = vector.broadcast %30 : vector<6x1xf32> to vector<6x32xf32>
    %49 = arith.mulf %48, %41 : vector<6x32xf32>
    %50 = vector.broadcast %32 : vector<6x1xf32> to vector<6x32xf32>
    %51 = vector.broadcast %47 : vector<1x32xf32> to vector<6x32xf32>
    %52 = arith.mulf %50, %51 : vector<6x32xf32>
    %53 = arith.addf %49, %52 : vector<6x32xf32>
    %54 = arith.truncf %53 : vector<6x32xf32> to vector<6x32xbf16>
    %c0_12 = arith.constant 0 : index
    %c0_13 = arith.constant 0 : index
    %c0_14 = arith.constant 0 : index
    %55 = vector.load %arg2[%c0_12, %c0_13, %c0_14] : memref<8x32x128xbf16, #tpu.memory_space<vmem>>, vector<1x32x32xbf16>
    %56 = vector.shape_cast %55 : vector<1x32x32xbf16> to vector<32x32xbf16>
    %cst_15 = arith.constant dense<0.000000e+00> : vector<6x32xf32>
    %57 = tpu.matmul %54, %56, %cst_15 {dimension_numbers = #tpu.dot_dimension_numbers<[1], [0], [0], [1], [0, 0, 1, 1], [], []>} : vector<6x32xbf16>, vector<32x32xbf16>, vector<6x32xf32> -> vector<6x32xf32>
    %c0_16 = arith.constant 0 : index
    %c0_17 = arith.constant 0 : index
    %58 = vector.load %arg3[%c0_16, %c0_17] : memref<8x128xf32, #tpu.memory_space<vmem>>, vector<1x32xf32>
    %59 = vector.broadcast %58 : vector<1x32xf32> to vector<6x32xf32>
    %60 = arith.addf %57, %59 : vector<6x32xf32>
    %cst_18 = arith.constant 0.000000e+00 : f32
    %61 = vector.broadcast %cst_18 : f32 to vector<6x32xf32>
    %62 = arith.maximumf %60, %61 : vector<6x32xf32>
    %63 = arith.truncf %62 : vector<6x32xf32> to vector<6x32xbf16>
    %c1 = arith.constant 1 : index
    %c0_19 = arith.constant 0 : index
    %c0_20 = arith.constant 0 : index
    %64 = vector.load %arg2[%c1, %c0_19, %c0_20] : memref<8x32x128xbf16, #tpu.memory_space<vmem>>, vector<1x32x32xbf16>
    %65 = vector.shape_cast %64 : vector<1x32x32xbf16> to vector<32x32xbf16>
    %cst_21 = arith.constant dense<0.000000e+00> : vector<6x32xf32>
    %66 = tpu.matmul %63, %65, %cst_21 {dimension_numbers = #tpu.dot_dimension_numbers<[1], [0], [0], [1], [0, 0, 1, 1], [], []>} : vector<6x32xbf16>, vector<32x32xbf16>, vector<6x32xf32> -> vector<6x32xf32>
    %c1_22 = arith.constant 1 : index
    %c0_23 = arith.constant 0 : index
    %67 = vector.load %arg3[%c1_22, %c0_23] : memref<8x128xf32, #tpu.memory_space<vmem>>, vector<1x32xf32>
    %68 = vector.broadcast %67 : vector<1x32xf32> to vector<6x32xf32>
    %69 = arith.addf %66, %68 : vector<6x32xf32>
    %cst_24 = arith.constant 0.000000e+00 : f32
    %70 = vector.broadcast %cst_24 : f32 to vector<6x32xf32>
    %71 = arith.maximumf %69, %70 : vector<6x32xf32>
    %72 = arith.truncf %71 : vector<6x32xf32> to vector<6x32xbf16>
    %c2 = arith.constant 2 : index
    %c0_25 = arith.constant 0 : index
    %c0_26 = arith.constant 0 : index
    %73 = vector.load %arg2[%c2, %c0_25, %c0_26] : memref<8x32x128xbf16, #tpu.memory_space<vmem>>, vector<1x32x32xbf16>
    %74 = vector.shape_cast %73 : vector<1x32x32xbf16> to vector<32x32xbf16>
    %cst_27 = arith.constant dense<0.000000e+00> : vector<6x32xf32>
    %75 = tpu.matmul %72, %74, %cst_27 {dimension_numbers = #tpu.dot_dimension_numbers<[1], [0], [0], [1], [0, 0, 1, 1], [], []>} : vector<6x32xbf16>, vector<32x32xbf16>, vector<6x32xf32> -> vector<6x32xf32>
    %c2_28 = arith.constant 2 : index
    %c0_29 = arith.constant 0 : index
    %76 = vector.load %arg3[%c2_28, %c0_29] : memref<8x128xf32, #tpu.memory_space<vmem>>, vector<1x32xf32>
    %77 = vector.broadcast %76 : vector<1x32xf32> to vector<6x32xf32>
    %78 = arith.addf %75, %77 : vector<6x32xf32>
    %cst_30 = arith.constant 0.000000e+00 : f32
    %79 = vector.broadcast %cst_30 : f32 to vector<6x32xf32>
    %80 = arith.maximumf %78, %79 : vector<6x32xf32>
    %81 = arith.truncf %80 : vector<6x32xf32> to vector<6x32xbf16>
    %c3 = arith.constant 3 : index
    %c0_31 = arith.constant 0 : index
    %c0_32 = arith.constant 0 : index
    %82 = vector.load %arg2[%c3, %c0_31, %c0_32] : memref<8x32x128xbf16, #tpu.memory_space<vmem>>, vector<1x32x32xbf16>
    %83 = vector.shape_cast %82 : vector<1x32x32xbf16> to vector<32x32xbf16>
    %cst_33 = arith.constant dense<0.000000e+00> : vector<6x32xf32>
    %84 = tpu.matmul %81, %83, %cst_33 {dimension_numbers = #tpu.dot_dimension_numbers<[1], [0], [0], [1], [0, 0, 1, 1], [], []>} : vector<6x32xbf16>, vector<32x32xbf16>, vector<6x32xf32> -> vector<6x32xf32>
    %c3_34 = arith.constant 3 : index
    %c0_35 = arith.constant 0 : index
    %85 = vector.load %arg3[%c3_34, %c0_35] : memref<8x128xf32, #tpu.memory_space<vmem>>, vector<1x32xf32>
    %86 = vector.broadcast %85 : vector<1x32xf32> to vector<6x32xf32>
    %87 = arith.addf %84, %86 : vector<6x32xf32>
    %cst_36 = arith.constant 0.000000e+00 : f32
    %88 = vector.broadcast %cst_36 : f32 to vector<6x32xf32>
    %89 = arith.maximumf %87, %88 : vector<6x32xf32>
    %90 = arith.truncf %89 : vector<6x32xf32> to vector<6x32xbf16>
    %c4 = arith.constant 4 : index
    %c0_37 = arith.constant 0 : index
    %c0_38 = arith.constant 0 : index
    %91 = vector.load %arg2[%c4, %c0_37, %c0_38] : memref<8x32x128xbf16, #tpu.memory_space<vmem>>, vector<1x32x16xbf16>
    %92 = vector.shape_cast %91 : vector<1x32x16xbf16> to vector<32x16xbf16>
    %cst_39 = arith.constant dense<0.000000e+00> : vector<6x16xf32>
    %93 = tpu.matmul %90, %92, %cst_39 {dimension_numbers = #tpu.dot_dimension_numbers<[1], [0], [0], [1], [0, 0, 1, 1], [], []>} : vector<6x32xbf16>, vector<32x16xbf16>, vector<6x16xf32> -> vector<6x16xf32>
    %c4_40 = arith.constant 4 : index
    %c0_41 = arith.constant 0 : index
    %94 = vector.load %arg3[%c4_40, %c0_41] : memref<8x128xf32, #tpu.memory_space<vmem>>, vector<1x16xf32>
    %95 = vector.broadcast %94 : vector<1x16xf32> to vector<6x16xf32>
    %96 = arith.addf %93, %95 : vector<6x16xf32>
    %cst_42 = arith.constant 0.000000e+00 : f32
    %97 = vector.broadcast %cst_42 : f32 to vector<6x16xf32>
    %98 = arith.maximumf %96, %97 : vector<6x16xf32>
    %99 = arith.truncf %98 : vector<6x16xf32> to vector<6x16xbf16>
    %c5 = arith.constant 5 : index
    %c0_43 = arith.constant 0 : index
    %c0_44 = arith.constant 0 : index
    %100 = vector.load %arg2[%c5, %c0_43, %c0_44] : memref<8x32x128xbf16, #tpu.memory_space<vmem>>, vector<1x16x16xbf16>
    %101 = vector.shape_cast %100 : vector<1x16x16xbf16> to vector<16x16xbf16>
    %cst_45 = arith.constant dense<0.000000e+00> : vector<6x16xf32>
    %102 = tpu.matmul %99, %101, %cst_45 {dimension_numbers = #tpu.dot_dimension_numbers<[1], [0], [0], [1], [0, 0, 1, 1], [], []>} : vector<6x16xbf16>, vector<16x16xbf16>, vector<6x16xf32> -> vector<6x16xf32>
    %c5_46 = arith.constant 5 : index
    %c0_47 = arith.constant 0 : index
    %103 = vector.load %arg3[%c5_46, %c0_47] : memref<8x128xf32, #tpu.memory_space<vmem>>, vector<1x16xf32>
    %104 = vector.broadcast %103 : vector<1x16xf32> to vector<6x16xf32>
    %105 = arith.addf %102, %104 : vector<6x16xf32>
    %cst_48 = arith.constant 0.000000e+00 : f32
    %106 = vector.broadcast %cst_48 : f32 to vector<6x16xf32>
    %107 = arith.maximumf %105, %106 : vector<6x16xf32>
    %108 = arith.truncf %107 : vector<6x16xf32> to vector<6x16xbf16>
    %c6 = arith.constant 6 : index
    %c0_49 = arith.constant 0 : index
    %c0_50 = arith.constant 0 : index
    %109 = vector.load %arg2[%c6, %c0_49, %c0_50] : memref<8x32x128xbf16, #tpu.memory_space<vmem>>, vector<1x16x16xbf16>
    %110 = vector.shape_cast %109 : vector<1x16x16xbf16> to vector<16x16xbf16>
    %cst_51 = arith.constant dense<0.000000e+00> : vector<6x16xf32>
    %111 = tpu.matmul %108, %110, %cst_51 {dimension_numbers = #tpu.dot_dimension_numbers<[1], [0], [0], [1], [0, 0, 1, 1], [], []>} : vector<6x16xbf16>, vector<16x16xbf16>, vector<6x16xf32> -> vector<6x16xf32>
    %c6_52 = arith.constant 6 : index
    %c0_53 = arith.constant 0 : index
    %112 = vector.load %arg3[%c6_52, %c0_53] : memref<8x128xf32, #tpu.memory_space<vmem>>, vector<1x16xf32>
    %113 = vector.broadcast %112 : vector<1x16xf32> to vector<6x16xf32>
    %114 = arith.addf %111, %113 : vector<6x16xf32>
    %cst_54 = arith.constant 0.000000e+00 : f32
    %115 = vector.broadcast %cst_54 : f32 to vector<6x16xf32>
    %116 = arith.maximumf %114, %115 : vector<6x16xf32>
    %117 = arith.truncf %116 : vector<6x16xf32> to vector<6x16xbf16>
    %c7 = arith.constant 7 : index
    %c0_55 = arith.constant 0 : index
    %c0_56 = arith.constant 0 : index
    %118 = vector.load %arg2[%c7, %c0_55, %c0_56] : memref<8x32x128xbf16, #tpu.memory_space<vmem>>, vector<1x16x128xbf16>
    %119 = vector.shape_cast %118 : vector<1x16x128xbf16> to vector<16x128xbf16>
    %cst_57 = arith.constant dense<0.000000e+00> : vector<6x128xf32>
    %120 = tpu.matmul %117, %119, %cst_57 {dimension_numbers = #tpu.dot_dimension_numbers<[1], [0], [0], [1], [0, 0, 1, 1], [], []>} : vector<6x16xbf16>, vector<16x128xbf16>, vector<6x128xf32> -> vector<6x128xf32>
    %c7_58 = arith.constant 7 : index
    %c0_59 = arith.constant 0 : index
    %121 = vector.load %arg3[%c7_58, %c0_59] : memref<8x128xf32, #tpu.memory_space<vmem>>, vector<1x128xf32>
    %122 = vector.broadcast %121 : vector<1x128xf32> to vector<6x128xf32>
    %123 = arith.addf %120, %122 : vector<6x128xf32>
    %124 = tpu.iota {dimensions = array<i32: 1>} : vector<6x128xi32>
    %cst_60 = arith.constant 0.000000e+00 : f32
    %125 = vector.broadcast %cst_60 : f32 to vector<6x128xf32>
    %126 = arith.subf %125, %123 : vector<6x128xf32>
    %127 = math.exp %126 : vector<6x128xf32>
    %cst_61 = arith.constant 1.000000e+00 : f32
    %128 = vector.broadcast %cst_61 : f32 to vector<6x128xf32>
    %129 = arith.addf %128, %127 : vector<6x128xf32>
    %130 = tpu.reciprocal %129 {approx = true} : vector<6x128xf32> -> vector<6x128xf32>
    %cst_62 = arith.constant 0.000000e+00 : f32
    %cst_63 = arith.constant 6.000000e+00 : f32
    %131 = vector.broadcast %cst_62 : f32 to vector<6x128xf32>
    %132 = arith.maximumf %131, %123 : vector<6x128xf32>
    %133 = vector.broadcast %cst_63 : f32 to vector<6x128xf32>
    %134 = arith.minimumf %133, %132 : vector<6x128xf32>
    %cst_64 = arith.constant 0.166666672 : f32
    %135 = vector.broadcast %cst_64 : f32 to vector<6x128xf32>
    %136 = arith.mulf %134, %135 : vector<6x128xf32>
    %c4_i32 = arith.constant 4 : i32
    %137 = vector.broadcast %c4_i32 : i32 to vector<6x128xi32>
    %138 = arith.cmpi slt, %124, %137 : vector<6x128xi32>
    %139 = arith.select %138, %130, %136 : vector<6x128xi1>, vector<6x128xf32>
    %c0_65 = arith.constant 0 : index
    %c0_66 = arith.constant 0 : index
    %140 = vector.load %arg4[%c0_65, %c0_66] : memref<6x128xf32, #tpu.memory_space<vmem>>, vector<6x128xf32>
    tpu.vector_store %arg4[%c0_65, %c0_66], %139 {strides = array<i32>} : memref<6x128xf32, #tpu.memory_space<vmem>>, vector<6x128xf32>,
    return
  }
}

</mosaic_0001>

<bundles_post_ra>
// kernel: forward.1
= control target key start
LH: loop header
LB: loop body
LE: loop exit
PB: predicated region body
PF: predicated region fallthrough
CT: control target
= control target key end

     0   :  { %9 = vsyncpa [#allocation3], 0  ;;  %s2255_s0 = inlined_call_operand.hbm [shape: f32[6,32,32], index: 0, kind: input, shape index: {}]   ;;  %s2256_s1 = inlined_call_operand.hbm [shape: f32[6,8], index: 1, kind: input, shape index: {}]   ;;  %s2257_s2 = inlined_call_operand.hbm [shape: bf16[8,32,128], index: 2, kind: input, shape index: {}]   ;;  %s2258_s3 = inlined_call_operand.hbm [shape: f32[8,128], index: 3, kind: input, shape index: {}]   ;;  %s2259_s4 = inlined_call_operand.vmem [shape: f32[6,128], index: 4, kind: output, shape index: {}]  }
   0x1   :  { %10 = vsyncpa [#allocation5], 0 }
   0x2   :  { %11 = vsyncpa [#allocation8], 0  ;;  %s1724_s15 = smov [#allocation4]   ;;  %s1725_s17 = smov [#allocation2]  }
   0x3   :  { %s30_s16 = sshll.u32 %s1724_s15, 4  ;;  %s17_s18 = sshll.u32 %s1725_s17, 4  ;;  %s31_s16 = int_to_ptr.vmem [resolvable:$true] %s30_s16  ;;  %s18_s18 = int_to_ptr.vmem [resolvable:$true] %s17_s18 }
   0x4   :  { %s1646_s19 = scalar_lea.vmem %s31_s16, 128  ;;  %p1651_p1 = scmp.lt.s32.totalorder %s31_s16, %s31_s16 }
   0x5   :  { %p1647_p0 = scmp.ne.s32.totalorder %s31_s16, %s1646_s19  ;;  %p1652_p2 = scmp.lt.s32.totalorder %s1646_s19, %s1646_s19 }
   0x7   :  { %p1653_p3 = por %p1652_p2, %p1651_p1 }
   0x9   :  { %p1654_p4 = pnand %p1653_p3, %p1647_p0 }
   0xb   :  { %1657 = shalt.err (!%p1654_p4)
}
   0xc   :  { %33 = dma.hbm_to_vmem [thread:$0]  %s2256_s1, 128, %s31_s16, [#allocation5]  }
   0xd   :  { %s1666_s22 = scalar_lea.vmem %s18_s18, 3072  ;;  %p1671_p6 = scmp.lt.s32.totalorder %s18_s18, %s18_s18 }
   0xe   :  { %p1667_p5 = scmp.ne.s32.totalorder %s18_s18, %s1666_s22  ;;  %p1672_p7 = scmp.lt.s32.totalorder %s1666_s22, %s1666_s22 }
  0x10   :  { %p1673_p8 = por %p1672_p7, %p1671_p6 }
  0x12   :  { %p1674_p9 = pnand %p1673_p8, %p1667_p5 }
  0x14   :  { %1677 = shalt.err (!%p1674_p9)
}
  0x15   :  { %s1726_s23 = smov 128   ;;  %s1727_s24 = smov 8  }
  0x16   :  { %23 = dma.hbm_to_vmem [thread:$0]  %s2255_s0, 3072, %s18_s18, [#allocation3], %s1726_s23, %s1726_s23, %s1727_s24  }
  0x17   :  { %s1728_s27 = smov [#allocation6]  }
  0x18   :  { %s39_s28 = sshll.u32 %s1728_s27, 4  ;;  %s40_s28 = int_to_ptr.vmem [resolvable:$true] %s39_s28 }
  0x19   :  { %s1686_s29 = scalar_lea.vmem %s40_s28, 2048  ;;  %p1691_p11 = scmp.lt.s32.totalorder %s40_s28, %s40_s28 }
  0x1a   :  { %p1687_p10 = scmp.ne.s32.totalorder %s40_s28, %s1686_s29  ;;  %p1692_p12 = scmp.lt.s32.totalorder %s1686_s29, %s1686_s29 }
  0x1c   :  { %p1693_p13 = por %p1692_p12, %p1691_p11 }
  0x1e   :  { %p1694_p0 = pnand %p1693_p13, %p1687_p10 }
  0x20   :  { %1697 = shalt.err (!%p1694_p0)
}
  0x21   :  { %s1729_s1 = smov 64   ;;  %s1730_s30 = smov 4  }
  0x22   :  { %45 = dma.hbm_to_vmem [thread:$0]  %s2257_s2, 2048, %s40_s28, [#allocation5], %s1729_s1, %s1729_s1, %s1730_s30  }
  0x23   :  { %s1731_s7 = smov [#allocation7]  }
  0x24   :  { %s52_s8 = sshll.u32 %s1731_s7, 4  ;;  %s53_s8 = int_to_ptr.vmem [resolvable:$true] %s52_s8 }
  0x25   :  { %s1706_s0 = scalar_lea.vmem %s53_s8, 128  ;;  %p1711_p2 = scmp.lt.s32.totalorder %s53_s8, %s53_s8 }
  0x26   :  { %p1707_p1 = scmp.ne.s32.totalorder %s53_s8, %s1706_s0  ;;  %p1712_p3 = scmp.lt.s32.totalorder %s1706_s0, %s1706_s0 }
  0x28   :  { %p1713_p4 = por %p1712_p3, %p1711_p2 }
  0x2a   :  { %p1714_p5 = pnand %p1713_p4, %p1707_p1 }
  0x2c   :  { %1717 = shalt.err (!%p1714_p5)
}
  0x2d   :  { %55 = dma.hbm_to_vmem [thread:$0]  %s2258_s3, 128, %s53_s8, [#allocation8]  }
  0x2e   :  { %1718 = dma.done.wait [#allocation3], 3072  }
  0x2f   :  { %1719 = vsyncadd [#allocation3], 4294964224 }
  0x30   :  { %1720 = dma.done.wait [#allocation5], 2176  }
  0x31   :  { %1721 = vsyncadd [#allocation5], 4294965120 }
  0x32   :  { %1722 = dma.done.wait [#allocation8], 128  }
  0x33   :  { %1723 = vsyncadd [#allocation8], 4294967168  ;;  %vm93_vm0 = vcmask 261120   ;;  %v1777_v0 = vld [vmem:[#allocation2 + $0x20] sm:$0xff]  ;;  %v1781_v2 = vld [vmem:[#allocation2 + $0x28] sm:$0xff]  ;;  %vm201_vm1 = vcmask 130112  }
  0x34   :  { %v1779_v1 = vld [vmem:[#allocation2] sm:$0xff]  ;;  %v106_v3 = vsel %vm93_vm0, %v1777_v0, 0.0  ;;  %v1787_v5 = vld [vmem:[#allocation2 + $0x8] sm:$0xff]  ;;  %v109_v6 = vsel %vm93_vm0, %v1781_v2, 0.0  ;;  %v332_v12 = vmul.f32 %v1781_v2, %v1781_v2  ;;  %v331_v13 = vmul.f32 %v1777_v0, %v1777_v0  ;;  %v1805_v16 = vld [vmem:[#allocation2 + $0x30] sm:$0xff]  ;;  %s1734_s2 = smov 1  }
  0x35   :  { %v94_v4 = vsel %vm93_vm0, %v1779_v1, 0.0  ;;  %107 = vadd.xlane.f32.xlu1 %v106_v3  ;;  %v97_v7 = vsel %vm93_vm0, %v1787_v5, 0.0  ;;  %v328_v8 = vmul.f32 %v1787_v5, %v1787_v5  ;;  %v327_v9 = vmul.f32 %v1779_v1, %v1779_v1  ;;  %v1807_v17 = vld [vmem:[#allocation2 + $0x10] sm:$0xff]  ;;  %v1809_v18 = vld [vmem:[#allocation2 + $0x48] sm:$0xff]  ;;  %v1815_v21 = vld [vmem:[#allocation2 + $0x40] sm:$0xff]  ;;  %s1736_s3 = smov 5  }
  0x36   :  { %95 = vadd.xlane.f32.xlu0 %v94_v4  ;;  %v366_v14 = vsel %vm93_vm0, %v332_v12, 0.0  ;;  %v363_v15 = vsel %vm93_vm0, %v331_v13, 0.0  ;;  %v112_v19 = vsel %vm93_vm0, %v1805_v16, 0.0  ;;  %v100_v20 = vsel %vm93_vm0, %v1807_v17, 0.0  ;;  %v1833_v32 = vld [vmem:[#allocation2 + $0x38] sm:$0xff]  ;;  %v1841_v36 = vld [vmem:[#allocation2 + $0x60] sm:$0xff] }
  0x37   :  { %v354_v10 = vsel %vm93_vm0, %v328_v8, 0.0  ;;  %v351_v11 = vsel %vm93_vm0, %v327_v9, 0.0  ;;  %v121_v22 = vsel %vm93_vm0, %v1809_v18, 0.0  ;;  %v118_v23 = vsel %vm93_vm0, %v1815_v21, 0.0  ;;  %v1835_v33 = vld [vmem:[#allocation2 + $0x18] sm:$0xff]  ;;  %v1843_v37 = vld [vmem:[#allocation2 + $0x50] sm:$0xff] }
  0x38   :  { %v333_v24 = vmul.f32 %v1805_v16, %v1805_v16  ;;  %v329_v25 = vmul.f32 %v1807_v17, %v1807_v17  ;;  %v336_v28 = vmul.f32 %v1809_v18, %v1809_v18  ;;  %v335_v29 = vmul.f32 %v1815_v21, %v1815_v21  ;;  %v1851_v41 = vld [vmem:[#allocation2 + $0x68] sm:$0xff]  ;;  %v1868_v52 = vld [vmem:[#allocation2 + $0x70] sm:$0xff]  ;;  %v1870_v53 = vld [vmem:[#allocation2 + $0x58] sm:$0xff]  ;;  %s1737_s11 = smov 122   ;;  %s1739_s12 = smov 7  }
  0x39   :  { %110 = vadd.xlane.f32.xlu1 %v109_v6  ;;  %v115_v34 = vsel %vm93_vm0, %v1833_v32, 0.0  ;;  %v103_v35 = vsel %vm93_vm0, %v1835_v33, 0.0  ;;  %v130_v38 = vsel %vm93_vm0, %v1841_v36, 0.0  ;;  %v124_v39 = vsel %vm93_vm0, %v1843_v37, 0.0  ;;  %v1876_v56 = vld [vmem:[#allocation2 + $0x88] sm:$0xff]  ;;  %v1878_v57 = vld [vmem:[#allocation2 + $0x80] sm:$0xff] }
  0x3a   :  { %98 = vadd.xlane.f32.xlu0 %v97_v7  ;;  %v369_v26 = vsel %vm93_vm0, %v333_v24, 0.0  ;;  %v357_v27 = vsel %vm93_vm0, %v329_v25, 0.0  ;;  %v378_v30 = vsel %vm93_vm0, %v336_v28, 0.0  ;;  %v375_v31 = vsel %vm93_vm0, %v335_v29, 0.0  ;;  %v1896_v8 = vld [vmem:[#allocation2 + $0x90] sm:$0xff]  ;;  %v1898_v9 = vld [vmem:[#allocation2 + $0x78] sm:$0xff] }
  0x3b   :  { %v330_v40 = vmul.f32 %v1835_v33, %v1835_v33  ;;  %v133_v43 = vsel %vm93_vm0, %v1851_v41, 0.0  ;;  %v337_v44 = vmul.f32 %v1843_v37, %v1843_v37  ;;  %v334_v45 = vmul.f32 %v1833_v32, %v1833_v32  ;;  %v1904_v12 = vld [vmem:[#allocation2 + $0xa8] sm:$0xff]  ;;  %v1906_v13 = vld [vmem:[#allocation2 + $0xa0] sm:$0xff]  ;;  %v1924_v28 = vld [vmem:[#allocation2 + $0xb0] sm:$0xff] }
  0x3c   :  { %v340_v48 = vmul.f32 %v1851_v41, %v1851_v41  ;;  %v339_v49 = vmul.f32 %v1841_v36, %v1841_v36  ;;  %v136_v54 = vsel %vm93_vm0, %v1868_v52, 0.0  ;;  %v127_v55 = vsel %vm93_vm0, %v1870_v53, 0.0  ;;  %v1926_v29 = vld [vmem:[#allocation2 + $0x98] sm:$0xff] }
  0x3d   :  { %355 = vadd.xlane.f32.xlu1 %v354_v10  ;;  %v360_v42 = vsel %vm93_vm0, %v330_v40, 0.0  ;;  %v381_v46 = vsel %vm93_vm0, %v337_v44, 0.0  ;;  %v372_v47 = vsel %vm93_vm0, %v334_v45, 0.0  ;;  %v145_v58 = vsel %vm93_vm0, %v1876_v56, 0.0 }
  0x3e   :  { %352 = vadd.xlane.f32.xlu0 %v351_v11  ;;  %v390_v50 = vsel %vm93_vm0, %v340_v48, 0.0  ;;  %v387_v51 = vsel %vm93_vm0, %v339_v49, 0.0  ;;  %v142_v59 = vsel %vm93_vm0, %v1878_v57, 0.0  ;;  %v341_v60 = vmul.f32 %v1868_v52, %v1868_v52 }
  0x3f   :  { %v338_v61 = vmul.f32 %v1870_v53, %v1870_v53  ;;  %v344_v3 = vmul.f32 %v1876_v56, %v1876_v56  ;;  %v343_v4 = vmul.f32 %v1878_v57, %v1878_v57  ;;  %v148_v10 = vsel %vm93_vm0, %v1896_v8, 0.0 }
  0x40   :  { %v393_v62 = vsel %vm93_vm0, %v341_v60, 0.0  ;;  %v139_v11 = vsel %vm93_vm0, %v1898_v9, 0.0  ;;  %v348_v24 = vmul.f32 %v1904_v12, %v1904_v12  ;;  %v347_v25 = vmul.f32 %v1906_v13, %v1906_v13 }
  0x41   :  { %367 = vadd.xlane.f32.xlu1 %v366_v14  ;;  %v384_v63 = vsel %vm93_vm0, %v338_v61, 0.0  ;;  %v402_v6 = vsel %vm93_vm0, %v344_v3, 0.0  ;;  %v399_v7 = vsel %vm93_vm0, %v343_v4, 0.0  ;;  %v157_v14 = vsel %vm93_vm0, %v1904_v12, 0.0 }
  0x42   :  { %364 = vadd.xlane.f32.xlu0 %v363_v15  ;;  %v154_v15 = vsel %vm93_vm0, %v1906_v13, 0.0  ;;  %v190_v45 = vlaneseq  ;;  %vm208_vm2 = vcmask 195712   ;;  %vm215_vm3 = vcmask 261312  }
  0x43   :  { %vm312_vm4 = vcmask 1041409   ;;  %vm314_vm5 = vcmask 1042434   ;;  %vm316_vm6 = vcmask 1043459   ;;  %vm318_vm7 = vcmask 1044484  }
  0x44   :  { %vm320_vm8 = vcmask 1045509   ;;  %vm323_vm9 = vcmask 259072   ;;  %vm1733_vm10 = vmmov 0   ;;  %vm577_vm12 = vcmask 1045504  }
  0x45   :  { %113 = vadd.xlane.f32.xlu1 %v112_v19  ;;  %v345_v19 = vmul.f32 %v1896_v8, %v1896_v8  ;;  %vm573_vm13 = vcmask 48128  }
  0x46   :  { %101 = vadd.xlane.f32.xlu0 %v100_v20  ;;  %v342_v20 = vmul.f32 %v1898_v9, %v1898_v9 }
  0x49   :  { %122 = vadd.xlane.f32.xlu1 %v121_v22  ;;  %v405_v22 = vsel %vm93_vm0, %v345_v19, 0.0 }
  0x4a   :  { %119 = vadd.xlane.f32.xlu0 %v118_v23  ;;  %v396_v23 = vsel %vm93_vm0, %v342_v20, 0.0 }
  0x4d   :  { %370 = vadd.xlane.f32.xlu1 %v369_v26  ;;  %v414_v26 = vsel %vm93_vm0, %v348_v24, 0.0 }
  0x4e   :  { %358 = vadd.xlane.f32.xlu0 %v357_v27  ;;  %v411_v27 = vsel %vm93_vm0, %v347_v25, 0.0 }
  0x51   :  { %379 = vadd.xlane.f32.xlu1 %v378_v30  ;;  %v160_v30 = vsel %vm93_vm0, %v1924_v28, 0.0 }
  0x52   :  { %376 = vadd.xlane.f32.xlu0 %v375_v31  ;;  %v151_v31 = vsel %vm93_vm0, %v1926_v29, 0.0 }
  0x55   :  { %116 = vadd.xlane.f32.xlu1 %v115_v34  ;;  %v349_v34 = vmul.f32 %v1924_v28, %v1924_v28 }
  0x56   :  { %104 = vadd.xlane.f32.xlu0 %v103_v35  ;;  %v346_v35 = vmul.f32 %v1926_v29, %v1926_v29 }
  0x58   :  { %v408_v40 = vsel %vm93_vm0, %v346_v35, 0.0 }
  0x59   :  { %131 = vadd.xlane.f32.xlu1 %v130_v38  ;;  %v1936_v38 = vld [vmem:[#allocation2 + $0xb8] sm:$0xff] }
  0x5a   :  { %125 = vadd.xlane.f32.xlu0 %v124_v39  ;;  %2261 = vst [vmem:[#allocation12_spill] sm:$0xff] %v1936_v38  ;;  %v417_v39 = vsel %vm93_vm0, %v349_v34, 0.0  ;;  %v163_v44 = vsel %vm93_vm0, %v1936_v38, 0.0 }
  0x5d   :  { %361 = vadd.xlane.f32.xlu1 %v360_v42  ;;  %v350_v42 = vmul.f32 %v1936_v38, %v1936_v38 }
  0x5e   :  { %134 = vadd.xlane.f32.xlu0 %v133_v43 }
  0x5f   :  { %v420_v43 = vsel %vm93_vm0, %v350_v42, 0.0 }
  0x61   :  { %382 = vadd.xlane.f32.xlu1 %v381_v46  ;;  %v1945_v46 = vand.u32 127, %v190_v45 }
  0x62   :  { %373 = vadd.xlane.f32.xlu0 %v372_v47  ;;  %v1947_v47 = vshrl.u32 %v190_v45, 7 }
  0x63   :  { %v196_v48 = vadd.s32 4294967288, %v1945_v46  ;;  %vm570_vm11 = vcmp.eq.s32.totalorder %v1945_v46, 0 }
  0x65   :  { %391 = vadd.xlane.f32.xlu1 %v390_v50 }
  0x66   :  { %388 = vadd.xlane.f32.xlu0 %v387_v51  ;;  %v1952_v51 = vsub.s32 %v1945_v46, %v1947_v47 }
  0x69   :  { %137 = vadd.xlane.f32.xlu1 %v136_v54  ;;  %v1955_v54 = vsub.s32 %v196_v48, %v1947_v47  ;;  %v210_v48 = vadd.s32 4294967272, %v1945_v46 }
  0x6a   :  { %128 = vadd.xlane.f32.xlu0 %v127_v55 }
  0x6d   :  { %146 = vadd.xlane.f32.xlu1 %v145_v58 }
  0x6e   :  { %143 = vadd.xlane.f32.xlu0 %v142_v59 }
  0x71   :  { %394 = vadd.xlane.f32.xlu1 %v393_v62 }
  0x72   :  { %385 = vadd.xlane.f32.xlu0 %v384_v63 }
  0x75   :  { %403 = vadd.xlane.f32.xlu1 %v402_v6 }
  0x76   :  { %400 = vadd.xlane.f32.xlu0 %v399_v7 }
  0x79   :  { %149 = vadd.xlane.f32.xlu1 %v148_v10 }
  0x7a   :  { %140 = vadd.xlane.f32.xlu0 %v139_v11  ;;  %v203_v11 = vadd.s32 4294967280, %v1945_v46 }
  0x7d   :  { %158 = vadd.xlane.f32.xlu1 %v157_v14 }
  0x7e   :  { %155 = vadd.xlane.f32.xlu0 %v154_v15 }
  0x81   :  { %406 = vadd.xlane.f32.xlu1 %v405_v22 }
  0x82   :  { %397 = vadd.xlane.f32.xlu0 %v396_v23  ;;  %v1970_v23 = vsub.s32 %v203_v11, %v1947_v47 }
  0x85   :  { %415 = vadd.xlane.f32.xlu1 %v414_v26 }
  0x86   :  { %412 = vadd.xlane.f32.xlu0 %v411_v27 }
  0x89   :  { %161 = vadd.xlane.f32.xlu1 %v160_v30 }
  0x8a   :  { %152 = vadd.xlane.f32.xlu0 %v151_v31 }
  0x8d   :  { %418 = vadd.xlane.f32.xlu1 %v417_v39 }
  0x8e   :  { %409 = vadd.xlane.f32.xlu0 %v408_v40 }
  0x91   :  { %421 = vadd.xlane.f32.xlu1 %v420_v43 }
  0x92   :  { %164 = vadd.xlane.f32.xlu0 %v163_v44 }
  0xbe   :  { %v108_v49 = vpop.xlane.xlu1 %107 }
  0xbf   :  { %v96_v50 = vpop.xlane.xlu0 %95  ;;  %v220_v59 = vrot.slane %v108_v49, %v1952_v51 }
  0xc0   :  { %v195_v60 = vrot.slane %v96_v50, %v1952_v51 }
  0xc2   :  { %v111_v55 = vpop.xlane.xlu1 %110 }
  0xc3   :  { %v99_v58 = vpop.xlane.xlu0 %98  ;;  %v224_v61 = vrot.slane %v111_v55, %v1955_v54  ;;  %v1982_v55 = vsub.s32 %v210_v48, %v1947_v47 }
  0xc4   :  { %v200_v62 = vrot.slane %v99_v58, %v1955_v54 }
  0xc5   :  { %v225_v63 = vsel %vm201_vm1, %v224_v61, %v220_v59 }
  0xc6   :  { %v202_v3 = vsel %vm201_vm1, %v200_v62, %v195_v60  ;;  %v356_v4 = vpop.xlane.xlu1 %355 }
  0xc7   :  { %v353_v6 = vpop.xlane.xlu0 %352  ;;  %v454_v7 = vrot.slane %v356_v4, %v1955_v54 }
  0xc8   :  { %v450_v10 = vrot.slane %v353_v6, %v1952_v51 }
  0xca   :  { %v455_v14 = vsel %vm201_vm1, %v454_v7, %v450_v10  ;;  %v368_v15 = vpop.xlane.xlu1 %367 }
  0xcb   :  { %v365_v19 = vpop.xlane.xlu0 %364  ;;  %v473_v20 = vrot.slane %v368_v15, %v1955_v54 }
  0xcc   :  { %v469_v22 = vrot.slane %v365_v19, %v1952_v51 }
  0xce   :  { %v474_v24 = vsel %vm201_vm1, %v473_v20, %v469_v22  ;;  %v114_v25 = vpop.xlane.xlu1 %113 }
  0xcf   :  { %v102_v26 = vpop.xlane.xlu0 %101  ;;  %v229_v27 = vrot.slane %v114_v25, %v1970_v23 }
  0xd0   :  { %v207_v30 = vrot.slane %v102_v26, %v1970_v23 }
  0xd1   :  { %v230_v31 = vsel %vm208_vm2, %v229_v27, %v225_v63 }
  0xd2   :  { %v209_v34 = vsel %vm208_vm2, %v207_v30, %v202_v3  ;;  %v123_v35 = vpop.xlane.xlu1 %122 }
  0xd3   :  { %v120_v39 = vpop.xlane.xlu0 %119  ;;  %v243_v40 = vrot.slane %v123_v35, %v1955_v54 }
  0xd4   :  { %v239_v42 = vrot.slane %v120_v39, %v1952_v51 }
  0xd6   :  { %v244_v43 = vsel %vm201_vm1, %v243_v40, %v239_v42  ;;  %v371_v44 = vpop.xlane.xlu1 %370 }
  0xd7   :  { %v359_v45 = vpop.xlane.xlu0 %358  ;;  %v478_v11 = vrot.slane %v371_v44, %v1970_v23 }
  0xd8   :  { %v459_v15 = vrot.slane %v359_v45, %v1970_v23 }
  0xd9   :  { %v479_v26 = vsel %vm208_vm2, %v478_v11, %v474_v24 }
  0xda   :  { %v380_v49 = vpop.xlane.xlu1 %379  ;;  %v460_v27 = vsel %vm208_vm2, %v459_v15, %v455_v14 }
  0xdb   :  { %v377_v50 = vpop.xlane.xlu0 %376 }
  0xde   :  { %v117_v58 = vpop.xlane.xlu1 %116 }
  0xdf   :  { %v105_v59 = vpop.xlane.xlu0 %104  ;;  %v234_v60 = vrot.slane %v117_v58, %v1982_v55 }
  0xe0   :  { %v214_v61 = vrot.slane %v105_v59, %v1982_v55 }
  0xe1   :  { %v235_v62 = vsel %vm215_vm3, %v234_v60, %v230_v31 }
  0xe2   :  { %v216_v63 = vsel %vm215_vm3, %v214_v61, %v209_v34  ;;  %v132_v4 = vpop.xlane.xlu1 %131 }
  0xe3   :  { %v313_v3 = vsel %vm312_vm4, %v235_v62, %v216_v63  ;;  %v126_v6 = vpop.xlane.xlu0 %125 }
  0xe4   :  { %v248_v40 = vrot.slane %v126_v6, %v1970_v23 }
  0xe6   :  { %v362_v7 = vpop.xlane.xlu1 %361  ;;  %v249_v24 = vsel %vm208_vm2, %v248_v40, %v244_v43  ;;  %v488_v43 = vrot.slane %v377_v50, %v1952_v51 }
  0xe7   :  { %v135_v10 = vpop.xlane.xlu0 %134  ;;  %v464_v19 = vrot.slane %v362_v7, %v1982_v55 }
  0xe9   :  { %v465_v30 = vsel %vm215_vm3, %v464_v19, %v460_v27 }
  0xea   :  { %v383_v20 = vpop.xlane.xlu1 %382 }
  0xeb   :  { %v374_v22 = vpop.xlane.xlu0 %373 }
  0xec   :  { %v483_v25 = vrot.slane %v374_v22, %v1982_v55 }
  0xee   :  { %v484_v31 = vsel %vm215_vm3, %v483_v25, %v479_v26  ;;  %v392_v35 = vpop.xlane.xlu1 %391  ;;  %v492_v25 = vrot.slane %v380_v49, %v1955_v54 }
  0xef   :  { %v1998_v34 = vsel %vm312_vm4, %v484_v31, %v465_v30  ;;  %v389_v39 = vpop.xlane.xlu0 %388  ;;  %v497_v30 = vrot.slane %v383_v20, %v1970_v23  ;;  %v511_v31 = vrot.slane %v392_v35, %v1955_v54 }
  0xf0   :  { %v507_v40 = vrot.slane %v389_v39, %v1952_v51 }
  0xf2   :  { %v138_v42 = vpop.xlane.xlu1 %137  ;;  %v512_v39 = vsel %vm201_vm1, %v511_v31, %v507_v40 }
  0xf3   :  { %v129_v44 = vpop.xlane.xlu0 %128 }
  0xf4   :  { %v253_v45 = vrot.slane %v129_v44, %v1982_v55  ;;  %v267_v44 = vrot.slane %v138_v42, %v1970_v23 }
  0xf6   :  { %v254_v14 = vsel %vm215_vm3, %v253_v45, %v249_v24  ;;  %v147_v58 = vpop.xlane.xlu1 %146  ;;  %v258_v45 = vrot.slane %v132_v4, %v1952_v51  ;;  %v493_v24 = vsel %vm201_vm1, %v492_v25, %v488_v43 }
  0xf7   :  { %v2005_v48 = vsel %vm314_vm5, %v254_v14, %v313_v3  ;;  %v144_v59 = vpop.xlane.xlu0 %143  ;;  %v262_v3 = vrot.slane %v135_v10, %v1955_v54  ;;  %v281_v49 = vrot.slane %v147_v58, %v1955_v54  ;;  %v498_v35 = vsel %vm208_vm2, %v497_v30, %v493_v24 }
  0xf8   :  { %v277_v50 = vrot.slane %v144_v59, %v1952_v51 }
  0xf9   :  { %v263_v20 = vsel %vm201_vm1, %v262_v3, %v258_v45 }
  0xfa   :  { %v395_v60 = vpop.xlane.xlu1 %394  ;;  %v268_v4 = vsel %vm208_vm2, %v267_v44, %v263_v20  ;;  %v282_v30 = vsel %vm201_vm1, %v281_v49, %v277_v50 }
  0xfb   :  { %v386_v61 = vpop.xlane.xlu0 %385  ;;  %v516_v42 = vrot.slane %v395_v60, %v1970_v23 }
  0xfc   :  { %v502_v14 = vrot.slane %v386_v61, %v1982_v55 }
  0xfe   :  { %v404_v62 = vpop.xlane.xlu1 %403  ;;  %v503_v31 = vsel %vm215_vm3, %v502_v14, %v498_v35 }
  0xff   :  { %v401_v63 = vpop.xlane.xlu0 %400  ;;  %v530_v58 = vrot.slane %v404_v62, %v1955_v54 }
 0x100   :  { %v526_v59 = vrot.slane %v401_v63, %v1952_v51 }
 0x102   :  { %v150_v7 = vpop.xlane.xlu1 %149  ;;  %v531_v45 = vsel %vm201_vm1, %v530_v58, %v526_v59 }
 0x103   :  { %v141_v6 = vpop.xlane.xlu0 %140  ;;  %v286_v61 = vrot.slane %v150_v7, %v1970_v23 }
 0x104   :  { %v272_v25 = vrot.slane %v141_v6, %v1982_v55 }
 0x106   :  { %v159_v11 = vpop.xlane.xlu1 %158  ;;  %v273_v49 = vsel %vm215_vm3, %v272_v25, %v268_v4 }
 0x107   :  { %v156_v15 = vpop.xlane.xlu0 %155  ;;  %v300_v40 = vrot.slane %v159_v11, %v1955_v54 }
 0x108   :  { %v296_v63 = vrot.slane %v156_v15, %v1952_v51 }
 0x10a   :  { %v407_v19 = vpop.xlane.xlu1 %406 }
 0x10b   :  { %v398_v22 = vpop.xlane.xlu0 %397  ;;  %v535_v43 = vrot.slane %v407_v19, %v1970_v23 }
 0x10c   :  { %v521_v3 = vrot.slane %v398_v22, %v1982_v55  ;;  %v517_v22 = vsel %vm208_vm2, %v516_v42, %v512_v39 }
 0x10d   :  { %v536_v15 = vsel %vm208_vm2, %v535_v43, %v531_v45 }
 0x10e   :  { %v416_v26 = vpop.xlane.xlu1 %415 }
 0x10f   :  { %v413_v27 = vpop.xlane.xlu0 %412  ;;  %v549_v7 = vrot.slane %v416_v26, %v1955_v54  ;;  %v522_v26 = vsel %vm215_vm3, %v521_v3, %v517_v22  ;;  %v678_v22 = vadd.s32 16, %v1947_v47 }
 0x110   :  { %v545_v6 = vrot.slane %v413_v27, %v1952_v51  ;;  %v562_v27 = vsel %vm314_vm5, %v503_v31, %v1998_v34 }
 0x111   :  { %v563_v34 = vsel %vm316_vm6, %v522_v26, %v562_v27  ;;  %vm682_vm15 = vcmp.ge.s32.totalorder %v1945_v46, %v678_v22 }
 0x112   :  { %v162_v10 = vpop.xlane.xlu1 %161  ;;  %v550_v39 = vsel %vm201_vm1, %v549_v7, %v545_v6  ;;  %v2074_v7 = vld [vmem:[#allocation4] sm:$0x3f] }
 0x113   :  { %v153_v38 = vpop.xlane.xlu0 %152  ;;  %v305_v24 = vrot.slane %v162_v10, %v1970_v23  ;;  %v301_v10 = vsel %vm201_vm1, %v300_v40, %v296_v63 }
 0x114   :  { %v291_v60 = vrot.slane %v153_v38, %v1982_v55  ;;  %v287_v38 = vsel %vm208_vm2, %v286_v61, %v282_v30  ;;  %v317_v61 = vsel %vm316_vm6, %v273_v49, %v2005_v48 }
 0x115   :  { %v306_v58 = vsel %vm208_vm2, %v305_v24, %v301_v10 }
 0x116   :  { %v419_v44 = vpop.xlane.xlu1 %418  ;;  %v292_v50 = vsel %vm215_vm3, %v291_v60, %v287_v38 }
 0x117   :  { %v410_v62 = vpop.xlane.xlu0 %409  ;;  %v554_v11 = vrot.slane %v419_v44, %v1970_v23  ;;  %v319_v30 = vsel %vm318_vm7, %v292_v50, %v317_v61 }
 0x118   :  { %v540_v19 = vrot.slane %v410_v62, %v1982_v55  ;;  %v1732_v62 = vmov 0.0  }
 0x119   :  { %v555_v59 = vsel %vm208_vm2, %v554_v11, %v550_v39  ;;  %1537 = vmatprep.subr.mxu0 %v1732_v62  ;;  %1542 = vmatprep.subr.bf16.mxu1 %v1732_v62  ;;  %v1481_v38 = vsel %vm682_vm15, 1.0, %v1732_v62  ;;  %v679_v39 = vadd.s32 24, %v1947_v47 }
 0x11a   :  { %v541_v14 = vsel %vm215_vm3, %v540_v19, %v536_v15  ;;  %v422_v20 = vpop.xlane.xlu1 %421  ;;  %1539 = vmatprep.mubr.msk.f32.mxu0 %vm1733_vm10, %v1732_v62  ;;  %1546 = vmatprep.mubr.msk.bf16.mxu1 %vm1733_vm10, %v1732_v62  ;;  %v677_v19 = vadd.s32 8, %v1947_v47  ;;  %v698_v49 = vmul.f32 %v1481_v38, %v1805_v16 }
 0x11b   :  { %v165_v35 = vpop.xlane.xlu0 %164  ;;  %v559_v4 = vrot.slane %v422_v20, %v1982_v55  ;;  %v564_v43 = vsel %vm318_vm7, %v541_v14, %v563_v34 }
 0x11c   :  { %v310_v42 = vrot.slane %v165_v35, %v1982_v55  ;;  %vm681_vm14 = vcmp.ge.s32.totalorder %v1945_v46, %v677_v19  ;;  %v734_v15 = vsel %vm93_vm0, %v698_v49, 0.0 }
 0x11d   :  { %v560_v25 = vsel %vm215_vm3, %v559_v4, %v555_v59  ;;  %v2084_v45 = vsel %vm681_vm14, 1.0, %v1732_v62  ;;  %v702_v59 = vmul.f32 %v1481_v38, %v1843_v37 }
 0x11e   :  { %v311_v3 = vsel %vm215_vm3, %v310_v42, %v306_v58  ;;  %v565_v31 = vsel %vm320_vm8, %v560_v25, %v564_v43  ;;  %v693_v24 = vmul.f32 %v2084_v45, %v1787_v5  ;;  %v697_v10 = vmul.f32 %v2084_v45, %v1781_v2 }
 0x11f   :  { %v321_v40 = vsel %vm320_vm8, %v311_v3, %v319_v30  ;;  %v567_v60 = vsel %vm323_vm9, %v565_v31, 0.0  ;;  %v694_v42 = vmul.f32 %v1481_v38, %v1807_v17  ;;  %v746_v34 = vsel %vm93_vm0, %v702_v59, 0.0 }
 0x120   :  { %v324_v44 = vsel %vm323_vm9, %v321_v40, 0.0  ;;  %568 = vadd.xlane.f32.xlu1 %v567_v60  ;;  %v719_v11 = vsel %vm93_vm0, %v693_v24, 0.0  ;;  %vm680_vm9 = vcmp.ge.s32.totalorder %v1945_v46, %v1947_v47  ;;  %v731_v4 = vsel %vm93_vm0, %v697_v10, 0.0 }
 0x121   :  { %325 = vadd.xlane.f32.xlu0 %v324_v44  ;;  %v2100_v5 = vsel %vm680_vm9, 1.0, %v1732_v62  ;;  %v706_v25 = vmul.f32 %v1481_v38, %v1868_v52  ;;  %v710_v3 = vmul.f32 %v1481_v38, %v1896_v8  ;;  %v714_v31 = vmul.f32 %v1481_v38, %v1924_v28 }
 0x122   :  { %v692_v16 = vmul.f32 %v2100_v5, %v1779_v1  ;;  %v696_v20 = vmul.f32 %v2100_v5, %v1777_v0  ;;  %v722_v1 = vsel %vm93_vm0, %v694_v42, 0.0  ;;  %v700_v0 = vmul.f32 %v2100_v5, %v1815_v21 }
 0x123   :  { %v705_v21 = vmul.f32 %v2084_v45, %v1851_v41  ;;  %v758_v43 = vsel %vm93_vm0, %v706_v25, 0.0  ;;  %v770_v30 = vsel %vm93_vm0, %v710_v3, 0.0  ;;  %v713_v41 = vmul.f32 %v2084_v45, %v1904_v12 }
 0x124   :  { %720 = vadd.xlane.f32.xlu1 %v719_v11  ;;  %v716_v14 = vsel %vm93_vm0, %v692_v16, 0.0  ;;  %v728_v35 = vsel %vm93_vm0, %v696_v20, 0.0  ;;  %v740_v2 = vsel %vm93_vm0, %v700_v0, 0.0  ;;  %v782_v40 = vsel %vm93_vm0, %v714_v31, 0.0 }
 0x125   :  { %v755_v61 = vsel %vm93_vm0, %v705_v21, 0.0  ;;  %v779_v52 = vsel %vm93_vm0, %v713_v41, 0.0  ;;  %v701_v12 = vmul.f32 %v2084_v45, %v1809_v18  ;;  %v704_v22 = vmul.f32 %v2100_v5, %v1841_v36 }
 0x126   :  { %v708_v36 = vmul.f32 %v2100_v5, %v1878_v57 }
 0x127   :  { %v743_v28 = vsel %vm93_vm0, %v701_v12, 0.0  ;;  %v752_v24 = vsel %vm93_vm0, %v704_v22, 0.0 }
 0x128   :  { %735 = vadd.xlane.f32.xlu1 %v734_v15 }
 0x1a9   :  { %v569_v48 = vpop.xlane.xlu1 %568 }
 0x1aa   :  { %v326_v63 = vpop.xlane.xlu0 %325 }
 0x1ab   :  { %v571_v6 = vsel %vm570_vm11, %v326_v63, %v569_v48  ;;  %vm683_vm11 = vcmp.ge.s32.totalorder %v1945_v46, %v679_v39  ;;  %v1735_v48 = vmov 6  }
 0x1ac   :  { %1538 = vmatpush3.msk.msra.mxu0 %vm577_vm12, %v571_v6  ;;  %v2118_v58 = vsel %vm683_vm11, 1.0, %v1732_v62  ;;  %1616 = vset.pattern.permute.xlu0 %v1735_v48 }
 0x1ad   :  { %1540 = vmatmul.mubr.msk.f32.vlgmr.msra.gmra.mxu0 %vm573_vm13, %v2074_v7  ;;  %1550 = vmatprep.subr.bf16.mxu0 %v1732_v62  ;;  %v695_v47 = vmul.f32 %v2118_v58, %v1835_v33  ;;  %v709_v33 = vmul.f32 %v2084_v45, %v1876_v56  ;;  %v699_v6 = vmul.f32 %v2118_v58, %v1833_v32  ;;  %v721_v11 = vpop.xlane.xlu1 %720 }
 0x1ae   :  { %1554 = vmatprep.mubr.msk.bf16.mxu0 %vm1733_vm10, %v1732_v62  ;;  %v703_v32 = vmul.f32 %v2118_v58, %v1870_v53  ;;  %v707_v16 = vmul.f32 %v2118_v58, %v1898_v9  ;;  %v827_v39 = vrot.slane %v721_v11, %v1955_v54 }
 0x1af   :  { %v725_v17 = vsel %vm93_vm0, %v695_v47, 0.0  ;;  %v767_v37 = vsel %vm93_vm0, %v709_v33, 0.0  ;;  %v737_v19 = vsel %vm93_vm0, %v699_v6, 0.0 }
 0x1b0   :  { %v761_v20 = vsel %vm93_vm0, %v707_v16, 0.0 }
 0x1b1   :  { %v736_v38 = vpop.xlane.xlu1 %735 }
 0x26d   :  { %v2093_v26 = vpop.f32.mrf.mxu0 }
 0x26e   :  { %v651_v27 = vmul.f32 %v2093_v26, %v2093_v26 }
 0x26f   :  { %v1541_v50 = vpop.f32.mrf.mxu0 }
 0x270   :  { %653 = vrot.lane.b32.xlu0 %v651_v27, %s1734_s2  ;;  %v749_v27 = vsel %vm93_vm0, %v703_v32, 0.0  ;;  %v764_v50 = vsel %vm93_vm0, %v708_v36, 0.0 }
 0x28f   :  { %717 = vadd.xlane.f32.xlu0 %v716_v14 }
 0x293   :  { %729 = vadd.xlane.f32.xlu0 %v728_v35 }
 0x297   :  { %732 = vadd.xlane.f32.xlu0 %v731_v4 }
 0x29b   :  { %723 = vadd.xlane.f32.xlu0 %v722_v1 }
 0x29f   :  { %741 = vadd.xlane.f32.xlu0 %v740_v2  ;;  %v851_v2 = vrot.slane %v736_v38, %v1970_v23 }
 0x2a3   :  { %726 = vadd.xlane.f32.xlu0 %v725_v17 }
 0x2a7   :  { %747 = vadd.xlane.f32.xlu0 %v746_v34 }
 0x2ab   :  { %756 = vadd.xlane.f32.xlu0 %v755_v61 }
 0x2af   :  { %759 = vadd.xlane.f32.xlu0 %v758_v43 }
 0x2b3   :  { %768 = vadd.xlane.f32.xlu0 %v767_v37  ;;  %v1738_v37 = vmov 7  }
 0x2b4   :  { %1617 = vset.pattern.permute.xlu1 %v1738_v37 }
 0x2b7   :  { %771 = vadd.xlane.f32.xlu0 %v770_v30 }
 0x2bb   :  { %780 = vadd.xlane.f32.xlu0 %v779_v52  ;;  %v712_v52 = vmul.f32 %v2100_v5, %v1906_v13 }
 0x2bd   :  { %v776_v31 = vsel %vm93_vm0, %v712_v52, 0.0 }
 0x2bf   :  { %783 = vadd.xlane.f32.xlu0 %v782_v40  ;;  %v711_v40 = vmul.f32 %v2118_v58, %v1926_v29 }
 0x2e2   :  { %v654_v56 = vpop.permute.xlu0 %653 }
 0x2e3   :  { %v656_v60 = vsub.f32 %v2093_v26, %v654_v56  ;;  %v773_v56 = vsel %vm93_vm0, %v711_v40, 0.0 }
 0x2e5   :  { %v657_v44 = vmax.f32 %v656_v60, 0.0  ;;  %v2262_v60 = vld [vmem:[#allocation12_spill] sm:$0xff] }
 0x2e7   :  { %v658_v8 = vadd.f32 1e-05, %v657_v44  ;;  %v715_v44 = vmul.f32 %v2118_v58, %v2262_v60  ;;  %v1622_v60 = vld [vmem:[#allocation6 + $0x10] sm:$0xff]  }
 0x2e9   :  { %1632 = vrsqrt.f32 %v658_v8  ;;  %v785_v8 = vsel %vm93_vm0, %v715_v44, 0.0  ;;  %v1623_v44 = vld [vmem:[#allocation6 + $0x28] sm:$0xff]  }
 0x2f6   :  { %v1633_v63 = vpop.eup %1632 }
 0x2f7   :  { %661 = vrot.lane.b32.xlu1 %v1633_v63, %s1736_s3 }
 0x318   :  { %v718_v45 = vpop.xlane.xlu0 %717 }
 0x319   :  { %v823_v53 = vrot.slane %v718_v45, %v1952_v51 }
 0x31b   :  { %744 = vadd.xlane.f32.xlu1 %v743_v28  ;;  %v828_v9 = vsel %vm201_vm1, %v827_v39, %v823_v53  ;;  %v1619_v28 = vld [vmem:[#allocation6 + $0x8] sm:$0xff]  }
 0x31c   :  { %v730_v15 = vpop.xlane.xlu0 %729  ;;  %1543 = vmatpush3.bf16.msra.mxu1 %v1619_v28  ;;  %v1624_v28 = vld [vmem:[#allocation6 + $0x20] sm:$0xff]  }
 0x31d   :  { %v842_v4 = vrot.slane %v730_v15, %v1952_v51  ;;  %1544 = vmatprep.subr.bf16.mxu1 %v1732_v62 }
 0x31f   :  { %738 = vadd.xlane.f32.xlu1 %v737_v19 }
 0x320   :  { %v733_v14 = vpop.xlane.xlu0 %732 }
 0x321   :  { %v846_v57 = vrot.slane %v733_v14, %v1955_v54  ;;  %v1620_v14 = vld [vmem:[#allocation6] sm:$0xff]  }
 0x322   :  { %1545 = vmatpush3.bf16.msra.mxu1 %v1620_v14 }
 0x323   :  { %753 = vadd.xlane.f32.xlu1 %v752_v24  ;;  %v847_v47 = vsel %vm201_vm1, %v846_v57, %v842_v4  ;;  %1558 = vmatprep.subr.bf16.mxu1 %v1732_v62 }
 0x324   :  { %v724_v35 = vpop.xlane.xlu0 %723  ;;  %v852_v61 = vsel %vm208_vm2, %v851_v2, %v847_v47 }
 0x325   :  { %v832_v42 = vrot.slane %v724_v35, %v1970_v23 }
 0x327   :  { %v833_v59 = vsel %vm208_vm2, %v832_v42, %v828_v9 }
 0x328   :  { %v742_v10 = vpop.xlane.xlu0 %741 }
 0x329   :  { %v861_v48 = vrot.slane %v742_v10, %v1952_v51 }
 0x32c   :  { %v727_v1 = vpop.xlane.xlu0 %726 }
 0x32d   :  { %v837_v17 = vrot.slane %v727_v1, %v1982_v55 }
 0x32f   :  { %v838_v25 = vsel %vm215_vm3, %v837_v17, %v833_v59 }
 0x369   :  { %v662_v49 = vpop.permute.xlu1 %661 }
 0x36a   :  { %v664_v18 = vmul.f32 %v662_v49, %v2074_v7 }
 0x36c   :  { %793 = vperm.xlu0 %1616, %v664_v18   ;;  %666 = vrot.lane.b32.xlu1 %v664_v18, %s1737_s11 }
 0x370   :  { %1618 = vset.pattern.permute.xlu0 %v1738_v37 }
 0x390   :  { %750 = vadd.xlane.f32.xlu1 %v749_v27 }
 0x394   :  { %765 = vadd.xlane.f32.xlu1 %v764_v50 }
 0x398   :  { %762 = vadd.xlane.f32.xlu1 %v761_v20 }
 0x3a4   :  { %v745_v0 = vpop.xlane.xlu1 %744 }
 0x3a5   :  { %v865_v13 = vrot.slane %v745_v0, %v1955_v54 }
 0x3a7   :  { %v866_v63 = vsel %vm201_vm1, %v865_v13, %v861_v48 }
 0x3a8   :  { %v739_v34 = vpop.xlane.xlu1 %738 }
 0x3a9   :  { %v856_v21 = vrot.slane %v739_v34, %v1982_v55 }
 0x3ab   :  { %v857_v43 = vsel %vm215_vm3, %v856_v21, %v852_v61 }
 0x3ac   :  { %v934_v33 = vsel %vm312_vm4, %v857_v43, %v838_v25  ;;  %v754_v3 = vpop.xlane.xlu1 %753  ;;  %v788_v43 = vsub.s32 32, %v1945_v46 }
 0x3ad   :  { %v880_v22 = vrot.slane %v754_v3, %v1952_v51 }
 0x3ae   :  { %v1483_v3 = vcvt.s32.f32 %v788_v43  ;;  %vm789_vm4 = vcmp.gt.s32.totalorder %v788_v43, 0 }
 0x3de   :  { %v667_v30 = vpop.permute.xlu1 %666 }
 0x3df   :  { %v669_v41 = vmul.f32 %v667_v30, %v2093_v26  ;;  %v748_v26 = vpop.xlane.xlu0 %747 }
 0x3e0   :  { %v870_v5 = vrot.slane %v748_v26, %v1970_v23 }
 0x3e1   :  { %671 = vrot.lane.b32.xlu1 %v669_v41, %s1739_s12  ;;  %v1484_v41 = vsel %vm789_vm4, %v1483_v3, 0.0 }
 0x3e2   :  { %v871_v58 = vsel %vm208_vm2, %v870_v5, %v866_v63 }
 0x3e3   :  { %v757_v29 = vpop.xlane.xlu0 %756 }
 0x3e4   :  { %v884_v19 = vrot.slane %v757_v29, %v1955_v54 }
 0x3e6   :  { %v885_v45 = vsel %vm201_vm1, %v884_v19, %v880_v22 }
 0x3e7   :  { %v760_v49 = vpop.xlane.xlu0 %759 }
 0x3e8   :  { %v889_v18 = vrot.slane %v760_v49, %v1970_v23 }
 0x3ea   :  { %v890_v27 = vsel %vm208_vm2, %v889_v18, %v885_v45  ;;  %v1626_v45 = vld [vmem:[#allocation6 + $0x30] sm:$0xff]  }
 0x3eb   :  { %v769_v35 = vpop.xlane.xlu0 %768 }
 0x3ec   :  { %v903_v10 = vrot.slane %v769_v35, %v1955_v54 }
 0x3ef   :  { %v772_v4 = vpop.xlane.xlu0 %771 }
 0x3f0   :  { %v908_v57 = vrot.slane %v772_v4, %v1970_v23 }
 0x3f3   :  { %v781_v47 = vpop.xlane.xlu0 %780 }
 0x3f4   :  { %v922_v17 = vrot.slane %v781_v47, %v1955_v54  ;;  %v1501_v47 = vld [vmem:[#allocation7 + $0x4] ss:$0 sm:$0xff] }
 0x3f7   :  { %v784_v34 = vpop.xlane.xlu0 %783 }
 0x3f8   :  { %v927_v21 = vrot.slane %v784_v34, %v1970_v23 }
 0x405   :  { %777 = vadd.xlane.f32.xlu1 %v776_v31 }
 0x409   :  { %774 = vadd.xlane.f32.xlu1 %v773_v56 }
 0x40d   :  { %786 = vadd.xlane.f32.xlu1 %v785_v8  ;;  %v1485_v8 = vld [vmem:[#allocation7] ss:$0 sm:$0xff] }
 0x419   :  { %v751_v12 = vpop.xlane.xlu1 %750 }
 0x41a   :  { %v875_v6 = vrot.slane %v751_v12, %v1982_v55 }
 0x41c   :  { %v876_v24 = vsel %vm215_vm3, %v875_v6, %v871_v58  ;;  %v1625_v6 = vld [vmem:[#allocation6 + $0x38] sm:$0xff]   ;;  %v1489_v58 = vld [vmem:[#allocation7 + $0x1] ss:$0 sm:$0xff] }
 0x41d   :  { %v935_v11 = vsel %vm314_vm5, %v876_v24, %v934_v33  ;;  %v766_v38 = vpop.xlane.xlu1 %765 }
 0x41e   :  { %v899_v53 = vrot.slane %v766_v38, %v1952_v51 }
 0x420   :  { %v904_v42 = vsel %vm201_vm1, %v903_v10, %v899_v53  ;;  %v1628_v10 = vld [vmem:[#allocation6 + $0x40] sm:$0xff]   ;;  %v1629_v53 = vld [vmem:[#allocation6 + $0x50] sm:$0xff]  }
 0x421   :  { %v763_v32 = vpop.xlane.xlu1 %762 }
 0x422   :  { %v894_v15 = vrot.slane %v763_v32, %v1982_v55  ;;  %v1627_v32 = vld [vmem:[#allocation6 + $0x48] sm:$0xff]  }
 0x424   :  { %v895_v36 = vsel %vm215_vm3, %v894_v15, %v890_v27  ;;  %v1493_v15 = vld [vmem:[#allocation7 + $0x2] ss:$0 sm:$0xff] }
 0x425   :  { %v936_v50 = vsel %vm316_vm6, %v895_v36, %v935_v11 }
 0x453   :  { %v672_v16 = vpop.permute.xlu1 %671 }
 0x454   :  { %v674_v20 = vsub.f32 %v2074_v7, %v672_v16  ;;  %v909_v7 = vsel %vm208_vm2, %v908_v57, %v904_v42 }
 0x456   :  { %943 = vperm.xlu1 %1617, %v674_v20  }
 0x48e   :  { %v778_v39 = vpop.xlane.xlu1 %777 }
 0x48f   :  { %v918_v59 = vrot.slane %v778_v39, %v1952_v51  ;;  %v794_v51 = vpop.permute.xlu0 %793  ;;  %v1497_v39 = vld [vmem:[#allocation7 + $0x3] ss:$0 sm:$0xff] }
 0x491   :  { %v923_v25 = vsel %vm201_vm1, %v922_v17, %v918_v59  ;;  %vm1297_vm1 = vcmask 130048  }
 0x492   :  { %v775_v1 = vpop.xlane.xlu1 %774  ;;  %v928_v37 = vsel %vm208_vm2, %v927_v21, %v923_v25 }
 0x493   :  { %v913_v0 = vrot.slane %v775_v1, %v1982_v55 }
 0x495   :  { %v914_v9 = vsel %vm215_vm3, %v913_v0, %v909_v7 }
 0x496   :  { %v937_v2 = vsel %vm318_vm7, %v914_v9, %v936_v50  ;;  %v787_v61 = vpop.xlane.xlu1 %786 }
 0x497   :  { %v932_v33 = vrot.slane %v787_v61, %v1982_v55  ;;  %v1621_v55 = vld [vmem:[#allocation6 + $0x18] sm:$0xff]  }
 0x498   :  { %1551 = vmatpush3.bf16.msra.mxu0 %v1621_v55 }
 0x499   :  { %v933_v30 = vsel %vm215_vm3, %v932_v33, %v928_v37  ;;  %1552 = vmatprep.subr.bf16.mxu0 %v1732_v62  ;;  %v1631_v33 = vld [vmem:[#allocation6 + $0x70] sm:$0xff]   ;;  %v1505_v37 = vld [vmem:[#allocation7 + $0x5] ss:$0 sm:$0xff] }
 0x49a   :  { %v938_v54 = vsel %vm320_vm8, %v933_v30, %v937_v2  ;;  %v1630_v2 = vld [vmem:[#allocation6 + $0x60] sm:$0xff]  }
 0x49b   :  { %v940_v31 = vmul.f32 %v938_v54, %v794_v51 }
 0x49c   :  { %1553 = vmatpush3.bf16.msra.mxu0 %v1622_v60 }
 0x49d   :  { %1566 = vmatprep.subr.bf16.mxu0 %v1732_v62 }
 0x4d1   :  { %v944_v52 = vpop.permute.xlu1 %943 }
 0x4d2   :  { %v946_v23 = vmul.f32 %v1484_v41, %v944_v52 }
 0x4d4   :  { %v947_v40 = vadd.f32 %v946_v23, %v940_v31  ;;  %v1508_v23 = vld [vmem:[#allocation7 + $0x6] ss:$0 sm:$0xff] }
 0x4d6   :  { %v948_v56 = vpack.c.bf16 %v947_v40, %v947_v40 }
 0x4d8   :  { %1547 = vmatmul.mubr.msk.bf16.vlgmr.msra.gmra.mxu1 %vm93_vm0, %v948_v56 }
 0x4d9   :  { %1562 = vmatprep.mubr.msk.bf16.mxu1 %vm1733_vm10, %v1732_v62  ;;  %1559 = vmatpush3.bf16.msra.mxu1 %v1623_v44 }
 0x4da   :  { %1560 = vmatprep.subr.bf16.mxu1 %v1732_v62 }
 0x4dd   :  { %1561 = vmatpush3.bf16.msra.mxu1 %v1624_v28 }
 0x4de   :  { %1574 = vmatprep.subr.bf16.mxu1 %v1732_v62 }
 0x598   :  { %v1007_v26 = vpop.f32.mrf.mxu1 }
 0x599   :  { %v1008_v48 = vadd.f32 %v1485_v8, %v1007_v26  ;;  %v1511_v26 = vld [vmem:[#allocation7 + $0x7] ss:$0 sm:$0xff] }
 0x59a   :  { %v1548_v13 = vpop.f32.mrf.mxu1 }
 0x59b   :  { %v1013_v5 = vmax.f32 %v1008_v48, 0.0 }
 0x59c   :  { %v1010_v63 = vpop.f32.mrf.mxu1 }
 0x59d   :  { %v1014_v29 = vpack.c.bf16 %v1013_v5, %v1013_v5 }
 0x59e   :  { %v1549_v12 = vpop.f32.mrf.mxu1 }
 0x59f   :  { %1555 = vmatmul.mubr.msk.bf16.vlgmr.msra.gmra.mxu0 %vm93_vm0, %v1014_v29 }
 0x5a0   :  { %1570 = vmatprep.mubr.msk.bf16.mxu0 %vm1733_vm10, %v1732_v62  ;;  %1567 = vmatpush3.bf16.msra.mxu0 %v1625_v6 }
 0x5a1   :  { %1568 = vmatprep.subr.bf16.mxu0 %v1732_v62 }
 0x5a4   :  { %1569 = vmatpush3.bf16.msra.mxu0 %v1626_v45 }
 0x5a5   :  { %1582 = vmatprep.subr.bf16.mxu0 %v1732_v62 }
 0x65f   :  { %v1074_v19 = vpop.f32.mrf.mxu0 }
 0x660   :  { %v1075_v22 = vadd.f32 %v1489_v58, %v1074_v19 }
 0x661   :  { %v1556_v24 = vpop.f32.mrf.mxu0 }
 0x662   :  { %v1080_v11 = vmax.f32 %v1075_v22, 0.0 }
 0x663   :  { %v1077_v38 = vpop.f32.mrf.mxu0 }
 0x664   :  { %v1081_v49 = vpack.c.bf16 %v1080_v11, %v1080_v11 }
 0x665   :  { %v1557_v18 = vpop.f32.mrf.mxu0 }
 0x666   :  { %1563 = vmatmul.mubr.msk.bf16.vlgmr.msra.gmra.mxu1 %vm93_vm0, %v1081_v49 }
 0x667   :  { %1578 = vmatprep.mubr.msk.bf16.mxu1 %vm1733_vm10, %v1732_v62  ;;  %1575 = vmatpush3.bf16.msra.mxu1 %v1627_v32 }
 0x668   :  { %1576 = vmatprep.subr.bf16.mxu1 %v1732_v62 }
 0x66b   :  { %1577 = vmatpush3.bf16.msra.mxu1 %v1628_v10 }
 0x66c   :  { %1588 = vmatprep.subr.bf16.mxu1 %v1732_v62 }
 0x726   :  { %v1141_v27 = vpop.f32.mrf.mxu1 }
 0x727   :  { %v1142_v36 = vadd.f32 %v1493_v15, %v1141_v27 }
 0x728   :  { %v1564_v50 = vpop.f32.mrf.mxu1 }
 0x729   :  { %v1147_v16 = vmax.f32 %v1142_v36, 0.0 }
 0x72a   :  { %v1144_v14 = vpop.f32.mrf.mxu1 }
 0x72b   :  { %v1148_v20 = vpack.c.bf16 %v1147_v16, %v1147_v16 }
 0x72c   :  { %v1565_v35 = vpop.f32.mrf.mxu1 }
 0x72d   :  { %1571 = vmatmul.mubr.msk.bf16.vlgmr.msra.gmra.mxu0 %vm93_vm0, %v1148_v20 }
 0x72e   :  { %1584 = vmatprep.mubr.msk.bf16.mxu0 %vm1733_vm10, %v1732_v62  ;;  %1583 = vmatpush3.bf16.msra.mxu0 %v1629_v53 }
 0x72f   :  { %1594 = vmatprep.subr.bf16.mxu0 %v1732_v62 }
 0x7ed   :  { %v1208_v4 = vpop.f32.mrf.mxu0 }
 0x7ee   :  { %v1209_v57 = vadd.f32 %v1497_v39, %v1208_v4 }
 0x7ef   :  { %v1572_v42 = vpop.f32.mrf.mxu0 }
 0x7f0   :  { %v1214_v1 = vmax.f32 %v1209_v57, 0.0 }
 0x7f1   :  { %v1211_v0 = vpop.f32.mrf.mxu0 }
 0x7f2   :  { %v1215_v7 = vpack.c.bf16 %v1214_v1, %v1214_v1 }
 0x7f3   :  { %v1573_v9 = vpop.f32.mrf.mxu0 }
 0x7f4   :  { %1579 = vmatmul.mubr.msk.bf16.vlgmr.msra.gmra.mxu1 %vm93_vm0, %v1215_v7  ;;  %vm1467_vm0 = vcmp.lt.s32.totalorder %v1945_v46, 4 }
 0x7f5   :  { %1590 = vmatprep.mubr.msk.bf16.mxu1 %vm1733_vm10, %v1732_v62  ;;  %1589 = vmatpush3.bf16.msra.mxu1 %v1630_v2 }
 0x8b4   :  { %v1275_v17 = vpop.f32.mrf.mxu1 }
 0x8b5   :  { %v1276_v59 = vadd.f32 %v1501_v47, %v1275_v17 }
 0x8b6   :  { %v1580_v34 = vpop.f32.mrf.mxu1 }
 0x8b7   :  { %v1281_v21 = vmax.f32 %v1276_v59, 0.0 }
 0x8b8   :  { %v1278_v61 = vpop.f32.mrf.mxu1 }
 0x8b9   :  { %v1282_v25 = vpack.c.bf16 %v1281_v21, %v1281_v21 }
 0x8ba   :  { %v1581_v43 = vpop.f32.mrf.mxu1 }
 0x8bb   :  { %1585 = vmatmul.mubr.msk.bf16.vlgmr.msra.gmra.mxu0 %vm1297_vm1, %v1282_v25 }
 0x8bc   :  { %1596 = vmatprep.mubr.msk.bf16.mxu0 %vm1733_vm10, %v1732_v62  ;;  %1595 = vmatpush3.bf16.msra.mxu0 %v1631_v33 }
 0x97b   :  { %v1335_v3 = vpop.f32.mrf.mxu0 }
 0x97c   :  { %v1336_v30 = vadd.f32 %v1505_v37, %v1335_v3 }
 0x97d   :  { %v1586_v41 = vpop.f32.mrf.mxu0 }
 0x97e   :  { %v1341_v54 = vmax.f32 %v1336_v30, 0.0 }
 0x97f   :  { %v1338_v51 = vpop.f32.mrf.mxu0 }
 0x980   :  { %v1342_v52 = vpack.c.bf16 %v1341_v54, %v1341_v54 }
 0x981   :  { %v1587_v31 = vpop.f32.mrf.mxu0 }
 0x982   :  { %1591 = vmatmul.mubr.msk.bf16.vlgmr.msra.gmra.mxu1 %vm1297_vm1, %v1342_v52 }
 0xa42   :  { %v1394_v40 = vpop.f32.mrf.mxu1 }
 0xa43   :  { %v1395_v56 = vadd.f32 %v1508_v23, %v1394_v40 }
 0xa44   :  { %v1592_v55 = vpop.f32.mrf.mxu1 }
 0xa45   :  { %v1400_v60 = vmax.f32 %v1395_v56, 0.0 }
 0xa46   :  { %v1397_v44 = vpop.f32.mrf.mxu1 }
 0xa47   :  { %v1401_v8 = vpack.c.bf16 %v1400_v60, %v1400_v60 }
 0xa48   :  { %v1593_v62 = vpop.f32.mrf.mxu1 }
 0xa49   :  { %1597 = vmatmul.mubr.msk.bf16.vlgmr.msra.gmra.mxu0 %vm1297_vm1, %v1401_v8 }
 0xb09   :  { %v1453_v48 = vpop.f32.mrf.mxu0 }
 0xb0a   :  { %v1454_v13 = vadd.f32 %v1511_v26, %v1453_v48 }
 0xb0b   :  { %v1598_v5 = vpop.f32.mrf.mxu0 }
 0xb0c   :  { %v1459_v63 = vsub.f32 0.0, %v1454_v13  ;;  %v1464_v19 = vmax.f32 %v1454_v13, 0.0 }
 0xb0d   :  { %v1456_v29 = vpop.f32.mrf.mxu0 }
 0xb0e   :  { %v1460_v12 = vmul.f32 1.442695, %v1459_v63  ;;  %v1465_v22 = vmin.f32 %v1464_v19, 6.0 }
 0xb0f   :  { %v1599_v28 = vpop.f32.mrf.mxu0 }
 0xb10   :  { %1634 = vpow2.f32 %v1460_v12  ;;  %v1466_v24 = vmul.f32 0.16666667, %v1465_v22 }
 0xb1d   :  { %v1635_v6 = vpop.eup %1634 }
 0xb1e   :  { %v1462_v58 = vadd.f32 1.0, %v1635_v6 }
 0xb20   :  { %1636 = vrcp.f32 %v1462_v58 }
 0xb2d   :  { %v1637_v11 = vpop.eup %1636 }
 0xb2e   :  { %v1468_v38 = vsel %vm1467_vm0, %v1637_v11, %v1466_v24 }
 0xb2f   :  { %1469 = vst [vmem:[%s2259_s4] sm:$0x3f] %v1468_v38 }
 0xb30   :  { %1474 = vsyncpa [#allocation3], 1 }
 0xb31   :  { %1475 = vsyncpa [#allocation5], 1 }
 0xb32   :  { %1476 = vsyncpa [#allocation8], 1 }

</bundles_post_ra>
